<compile_context>
chip_gen: v7x
topology: tpu7x:2x2x1
jax: 0.10.0
libtpu: 0.0.40
codegen_flags: <defaults>
</compile_context>

<pallas_src>
import functools
import math

import jax
import jax.numpy as jnp
from jax.experimental import pallas as pl
from jax.experimental.pallas import tpu as pltpu

DROPOUT_P = 0.1
_GOLDEN_U32 = 0x9E3779B9  # seed mixing constant


def _hash_u32(h):
    """murmur3 finalizer: cheap, uniform-ish 32-bit mix using only VPU int ops."""
    h = (h ^ (h >> 16)) * jnp.uint32(0x85EBCA6B)
    h = (h ^ (h >> 13)) * jnp.uint32(0xC2B2AE35)
    h = h ^ (h >> 16)
    return h


def pe_dropout_kernel(seed_ref, x_ref, pe_ref, o_ref, *, drop_threshold, inv_keep):
    tile_s, bsz, d = x_ref.shape

    # --- positional-encoding add (pe broadcasts over the batch/sublane axis) ---
    y = x_ref[...] + pe_ref[...][:, None, :]

    # --- dropout: keep iff hash(seed, global flat index) >= p * 2^32 ---------
    s0 = pl.program_id(0) * tile_s
    # iota only on the last two dims of each shape (safest Mosaic lowering)
    s_local = jax.lax.broadcasted_iota(jnp.int32, (tile_s, d), 0)
    d_idx = jax.lax.broadcasted_iota(jnp.int32, (tile_s, d), 1)
    b_idx = jax.lax.broadcasted_iota(jnp.int32, (tile_s, bsz, d), 1)
    flat_sd = (s_local + s0) * (bsz * d) + d_idx          # [TILE_S, D]
    flat = flat_sd[:, None, :] + b_idx * d                # global element index

    seed_mix = seed_ref[0].astype(jnp.uint32) * jnp.uint32(_GOLDEN_U32)
    bits = _hash_u32(flat.astype(jnp.uint32) ^ seed_mix)
    keep = bits >= jnp.uint32(drop_threshold)

    o_ref[...] = jnp.where(
        keep, y * jnp.float32(inv_keep), jnp.float32(0.0)
    ).astype(o_ref.dtype)


def make_pe(d_model: int, max_len: int = 5000) -> jnp.ndarray:
    """Deterministic buffer construction, exactly as in the module __init__ (glue)."""
    assert d_model % 2 == 0, "d_model must be even (same limitation as the PyTorch module)"
    position = jnp.arange(max_len, dtype=jnp.float32)[:, None]          # [max_len, 1]
    div_term = jnp.exp(
        jnp.arange(0, d_model, 2, dtype=jnp.float32) * (-math.log(10000.0) / d_model)
    )                                                                    # [d_model/2]
    pe = jnp.zeros((max_len, 1, d_model), dtype=jnp.float32)
    pe = pe.at[:, 0, 0::2].set(jnp.sin(position * div_term))
    pe = pe.at[:, 0, 1::2].set(jnp.cos(position * div_term))
    return pe


def _pick_tile_s(S: int, B: int, D: int, *, bytes_per_elem: int = 4,
                 target_block_bytes: int = 2 << 20) -> int:
    """~2 MiB x-tiles => 2 x (x + out + pe) double-buffered stays well under the
    default scoped-VMEM limit on every generation (16 MiB v5e, 32 MiB v6e/v7x)."""
    rows = max(1, target_block_bytes // (B * D * bytes_per_elem))
    if rows >= S:
        return S
    rows = max(8, (rows // 8) * 8)   # pe block's sublane dim must be a multiple of 8
    return min(rows, S)


def positional_encoding(x: jnp.ndarray, pe: jnp.ndarray, *, seed: int = 0,
                        dropout_p: float = DROPOUT_P) -> jnp.ndarray:
    """x: [S, B, D]; pe: [max_len, 1, D] float32.  dropout_p=0.0 gives eval mode."""
    # TODO(synk): callers should pass a fresh `seed` per training step (e.g. derived
    #             from a jax.random key); mask bit-pattern differs from torch's RNG.
    S, B, D = x.shape
    pe_s = pe[:S, 0, :].astype(jnp.float32)          # [S, D] (glue slice/squeeze)
    seed_arr = jnp.asarray([seed], dtype=jnp.int32)

    tile_s = _pick_tile_s(S, B, D)
    grid = (pl.cdiv(S, tile_s),)

    drop_threshold = min(int(round(dropout_p * float(1 << 32))), (1 << 32) - 1)
    inv_keep = 1.0 / (1.0 - dropout_p) if dropout_p < 1.0 else 0.0

    kernel = functools.partial(
        pe_dropout_kernel, drop_threshold=drop_threshold, inv_keep=inv_keep
    )

    grid_spec = pltpu.PrefetchScalarGridSpec(
        num_scalar_prefetch=1,                        # seed lands in SMEM
        grid=grid,
        in_specs=[
            pl.BlockSpec((tile_s, B, D), lambda i, seed: (i, 0, 0)),  # x
            pl.BlockSpec((tile_s, D), lambda i, seed: (i, 0)),        # pe
        ],
        out_specs=pl.BlockSpec((tile_s, B, D), lambda i, seed: (i, 0, 0)),
    )

    return pl.pallas_call(
        kernel,
        out_shape=jax.ShapeDtypeStruct((S, B, D), x.dtype),
        grid_spec=grid_spec,
        compiler_params=pltpu.CompilerParams(
            dimension_semantics=("parallel",),        # shard seq tiles across TCs (v7x)
        ),
    )(seed_arr, x, pe_s)


if __name__ == "__main__":
    S, B, D = 8, 2, 32
    key = jax.random.PRNGKey(0)
    x = jax.random.normal(key, (S, B, D), dtype=jnp.float32)

    pe = make_pe(D)
    seed = 42
    out = jax.block_until_ready(positional_encoding(x, pe, seed=seed))

    assert out.shape == (S, B, D) and out.dtype == jnp.float32

    # reference: identical hash on the host -> bit-identical dropout mask
    y_ref = x + pe[:S]
    s_i, b_i, d_i = jnp.meshgrid(
        jnp.arange(S), jnp.arange(B), jnp.arange(D), indexing="ij"
    )
    flat = ((s_i * B + b_i) * D + d_i).astype(jnp.uint32)
    h = flat ^ (jnp.uint32(seed) * jnp.uint32(_GOLDEN_U32))
    h = (h ^ (h >> 16)) * jnp.uint32(0x85EBCA6B)
    h = (h ^ (h >> 13)) * jnp.uint32(0xC2B2AE35)
    h = h ^ (h >> 16)
    thr = jnp.uint32(min(int(round(DROPOUT_P * float(1 << 32))), (1 << 32) - 1))
    keep = h >= thr
    ref = jnp.where(keep, y_ref * jnp.float32(1.0 / (1.0 - DROPOUT_P)), 0.0)

    assert jnp.allclose(out, ref, atol=1e-5, rtol=1e-5)
    n_drop = int(jnp.sum(out == 0.0))
    assert 0 < n_drop < out.size      # some, but not all, elements dropped
    print("KERNEL_OK")
</pallas_src>

<mosaic_0001>
module attributes {stable_mosaic.version = 11 : i64} {
  func.func @pe_dropout_kernel(%arg0: i32, %arg1: memref<1xi32, #tpu.memory_space<smem>>, %arg2: memref<8x2x32xf32, #tpu.memory_space<vmem>>, %arg3: memref<8x32xf32, #tpu.memory_space<vmem>>, %arg4: memref<8x2x32xf32, #tpu.memory_space<vmem>>) attributes {dimension_semantics = [#tpu.dimension_semantics<parallel>], iteration_bounds = array<i64: 1>, scalar_prefetch = 1 : i64, scratch_operands = 0 : i64, tpu.core_type = #tpu.core_type<tc>, window_params = [{transform_indices = @transform_0, window_bounds = array<i64: 8, 2, 32>}, {transform_indices = @transform_1, window_bounds = array<i64: 8, 32>}, {transform_indices = @transform_2, window_bounds = array<i64: 8, 2, 32>}]} {
    %c0 = arith.constant 0 : index
    %c0_0 = arith.constant 0 : index
    %c0_1 = arith.constant 0 : index
    %0 = vector.load %arg2[%c0, %c0_0, %c0_1] : memref<8x2x32xf32, #tpu.memory_space<vmem>>, vector<8x2x32xf32>
    %c0_2 = arith.constant 0 : index
    %c0_3 = arith.constant 0 : index
    %1 = vector.load %arg3[%c0_2, %c0_3] : memref<8x32xf32, #tpu.memory_space<vmem>>, vector<8x32xf32>
    %2 = vector.shape_cast %1 : vector<8x32xf32> to vector<8x1x32xf32>
    %3 = vector.broadcast %2 : vector<8x1x32xf32> to vector<8x2x32xf32>
    %4 = arith.addf %0, %3 : vector<8x2x32xf32>
    %c8_i32 = arith.constant 8 : i32
    %5 = arith.muli %arg0, %c8_i32 : i32
    %6 = tpu.iota {dimensions = array<i32: 0>} : vector<8x32xi32>
    %7 = tpu.iota {dimensions = array<i32: 1>} : vector<8x32xi32>
    %8 = tpu.iota {dimensions = array<i32: 1>} : vector<8x2x32xi32>
    %9 = vector.broadcast %5 : i32 to vector<8x32xi32>
    %10 = arith.addi %6, %9 : vector<8x32xi32>
    %c64_i32 = arith.constant 64 : i32
    %11 = vector.broadcast %c64_i32 : i32 to vector<8x32xi32>
    %12 = arith.muli %10, %11 : vector<8x32xi32>
    %13 = arith.addi %12, %7 : vector<8x32xi32>
    %14 = vector.shape_cast %13 : vector<8x32xi32> to vector<8x1x32xi32>
    %c32_i32 = arith.constant 32 : i32
    %15 = vector.broadcast %c32_i32 : i32 to vector<8x2x32xi32>
    %16 = arith.muli %8, %15 : vector<8x2x32xi32>
    %17 = vector.broadcast %14 : vector<8x1x32xi32> to vector<8x2x32xi32>
    %18 = arith.addi %17, %16 : vector<8x2x32xi32>
    %c0_4 = arith.constant 0 : index
    %19 = memref.load %arg1[%c0_4] : memref<1xi32, #tpu.memory_space<smem>>
    %c-1640531527_i32 = arith.constant -1640531527 : i32
    %20 = arith.muli %19, %c-1640531527_i32 : i32
    %21 = vector.broadcast %20 : i32 to vector<8x2x32xi32>
    %22 = arith.xori %18, %21 : vector<8x2x32xi32>
    %c16_i32 = arith.constant 16 : i32
    %23 = vector.broadcast %c16_i32 : i32 to vector<8x2x32xi32>
    %24 = arith.shrui %22, %23 : vector<8x2x32xi32>
    %25 = arith.xori %22, %24 : vector<8x2x32xi32>
    %c-2048144789_i32 = arith.constant -2048144789 : i32
    %26 = vector.broadcast %c-2048144789_i32 : i32 to vector<8x2x32xi32>
    %27 = arith.muli %25, %26 : vector<8x2x32xi32>
    %c13_i32 = arith.constant 13 : i32
    %28 = vector.broadcast %c13_i32 : i32 to vector<8x2x32xi32>
    %29 = arith.shrui %27, %28 : vector<8x2x32xi32>
    %30 = arith.xori %27, %29 : vector<8x2x32xi32>
    %c-1028477387_i32 = arith.constant -1028477387 : i32
    %31 = vector.broadcast %c-1028477387_i32 : i32 to vector<8x2x32xi32>
    %32 = arith.muli %30, %31 : vector<8x2x32xi32>
    %c16_i32_5 = arith.constant 16 : i32
    %33 = vector.broadcast %c16_i32_5 : i32 to vector<8x2x32xi32>
    %34 = arith.shrui %32, %33 : vector<8x2x32xi32>
    %35 = arith.xori %32, %34 : vector<8x2x32xi32>
    %c429496730_i32 = arith.constant 429496730 : i32
    %36 = vector.broadcast %c429496730_i32 : i32 to vector<8x2x32xi32>
    %37 = arith.cmpi uge, %35, %36 : vector<8x2x32xi32>
    %cst = arith.constant 1.11111116 : f32
    %38 = vector.broadcast %cst : f32 to vector<8x2x32xf32>
    %39 = arith.mulf %4, %38 : vector<8x2x32xf32>
    %cst_6 = arith.constant 0.000000e+00 : f32
    %40 = vector.broadcast %cst_6 : f32 to vector<8x2x32xf32>
    %41 = arith.select %37, %39, %40 : vector<8x2x32xi1>, vector<8x2x32xf32>
    %c0_7 = arith.constant 0 : index
    %c0_8 = arith.constant 0 : index
    %c0_9 = arith.constant 0 : index
    %42 = vector.load %arg4[%c0_7, %c0_8, %c0_9] : memref<8x2x32xf32, #tpu.memory_space<vmem>>, vector<8x2x32xf32>
    tpu.vector_store %arg4[%c0_7, %c0_8, %c0_9], %41 {strides = array<i32>} : memref<8x2x32xf32, #tpu.memory_space<vmem>>, vector<8x2x32xf32>,
    return
  }
  func.func @transform_0(%arg0: i32, %arg1: memref<1xi32, #tpu.memory_space<smem>>) -> (i32, i32, i32) {
    %c0_i32 = arith.constant 0 : i32
    %c0_i32_0 = arith.constant 0 : i32
    %c0_i32_1 = arith.constant 0 : i32
    return %arg0, %c0_i32, %c0_i32_0 : i32, i32, i32
  }
  func.func @transform_1(%arg0: i32, %arg1: memref<1xi32, #tpu.memory_space<smem>>) -> (i32, i32) {
    %c0_i32 = arith.constant 0 : i32
    %c0_i32_0 = arith.constant 0 : i32
    return %arg0, %c0_i32 : i32, i32
  }
  func.func @transform_2(%arg0: i32, %arg1: memref<1xi32, #tpu.memory_space<smem>>) -> (i32, i32, i32) {
    %c0_i32 = arith.constant 0 : i32
    %c0_i32_0 = arith.constant 0 : i32
    %c0_i32_1 = arith.constant 0 : i32
    return %arg0, %c0_i32, %c0_i32_0 : i32, i32, i32
  }
}

</mosaic_0001>

<bundles_post_ra>
// kernel: tpu_custom_call.1
= control target key start
LH: loop header
LB: loop body
LE: loop exit
PB: predicated region body
PF: predicated region fallthrough
CT: control target
= control target key end

     0   :  { %9 = vsyncpa [#allocation5], 0  ;;  %s596_s0 = inlined_call_operand.<no memory space> [shape: s32[1], index: 0, kind: input, shape index: {}]   ;;  %s597_s1 = inlined_call_operand.hbm [shape: f32[8,2,32], index: 1, kind: input, shape index: {}]   ;;  %s598_s2 = inlined_call_operand.hbm [shape: f32[8,32], index: 2, kind: input, shape index: {}]   ;;  %s599_s3 = inlined_call_operand.hbm [shape: f32[8,2,32], index: 3, kind: output, shape index: {}]  }
   0x1   :  { %10 = vsyncpa [#allocation8], 0 }
   0x2   :  { %11 = vsyncpa [#allocation6], 0  ;;  %s450_s12 = smov [#allocation4]   ;;  %s378_s16 = scalar_lea.hbm %s597_s1, 256 }
   0x3   :  { %s17_s13 = sshll.u32 %s450_s12, 4  ;;  %p379_p0 = scmp.ne.s32.totalorder %s597_s1, %s378_s16  ;;  %s18_s13 = int_to_ptr.vmem [resolvable:$true] %s17_s13 }
   0x4   :  { %p382_p1 = scmp.lt.u32.totalorder %s378_s16, %s597_s1 }
   0x6   :  { %p384_p2 = pnand %p382_p1, %p379_p0 }
   0x8   :  { %387 = shalt.err (!%p384_p2)
}
   0x9   :  { %s388_s21 = scalar_lea.vmem %s18_s13, 256  ;;  %p393_p4 = scmp.lt.s32.totalorder %s18_s13, %s18_s13 }
   0xa   :  { %p389_p3 = scmp.ne.s32.totalorder %s18_s13, %s388_s21  ;;  %p394_p5 = scmp.lt.s32.totalorder %s388_s21, %s388_s21 }
   0xc   :  { %p395_p6 = por %p394_p5, %p393_p4 }
   0xe   :  { %p396_p7 = pnand %p395_p6, %p389_p3 }
  0x10   :  { %399 = shalt.err (!%p396_p7)
}
  0x11   :  { %s451_s22 = smov 32   ;;  %s452_s23 = smov 2  }
  0x12   :  { %23 = dma.hbm_to_vmem [thread:$0]  %s597_s1, 256, %s18_s13, [#allocation5], %s451_s22, %s451_s22, %s452_s23  }
  0x13   :  { %s453_s26 = smov [#allocation7]   ;;  %s400_s30 = scalar_lea.hbm %s598_s2, 128 }
  0x14   :  { %s30_s27 = sshll.u32 %s453_s26, 4  ;;  %p401_p8 = scmp.ne.s32.totalorder %s598_s2, %s400_s30  ;;  %s31_s27 = int_to_ptr.vmem [resolvable:$true] %s30_s27 }
  0x15   :  { %p404_p9 = scmp.lt.u32.totalorder %s400_s30, %s598_s2 }
  0x17   :  { %p406_p10 = pnand %p404_p9, %p401_p8 }
  0x19   :  { %409 = shalt.err (!%p406_p10)
}
  0x1a   :  { %s410_s8 = scalar_lea.vmem %s31_s27, 128  ;;  %p415_p12 = scmp.lt.s32.totalorder %s31_s27, %s31_s27 }
  0x1b   :  { %p411_p11 = scmp.ne.s32.totalorder %s31_s27, %s410_s8  ;;  %p416_p13 = scmp.lt.s32.totalorder %s410_s8, %s410_s8 }
  0x1d   :  { %p417_p0 = por %p416_p13, %p415_p12 }
  0x1f   :  { %p418_p1 = pnand %p417_p0, %p411_p11 }
  0x21   :  { %421 = shalt.err (!%p418_p1)
}
  0x22   :  { %33 = dma.hbm_to_vmem [thread:$0]  %s598_s2, 128, %s31_s27, [#allocation8]  }
  0x23   :  { %444 = dma.done.wait [#allocation5], 256  }
  0x24   :  { %445 = vsyncadd [#allocation5], 4294967040 }
  0x25   :  { %446 = dma.done.wait [#allocation8], 128  }
  0x26   :  { %447 = vsyncadd [#allocation8], 4294967168  ;;  %v54_v0 = vlaneseq  ;;  %v454_v1 = vmov 1966171168   ;;  %v48_v9 = vld [vmem:[#allocation7] sm:$0xff]  ;;  %vm345_vm0 = vcmask 254976  }
  0x27   :  { %v52_v2 = vunpack.c.l.s4 %v454_v1  ;;  %s247_s11 = smul.u32 2654435769, %s596_s0  ;;  %v50_v20 = vcombine.high %v48_v9, %v48_v9  ;;  %v40_v26 = vld [vmem:[#allocation4] sm:$0x3]  ;;  %v41_v44 = vld [vmem:[#allocation4 + $0x2] sm:$0x3] }
  0x28   :  { %v55_v3 = vshrl.u32 %v54_v0, 7  ;;  %v151_v4 = vand.u32 127, %v54_v0  ;;  %v42_v50 = vld [vmem:[#allocation4 + $0x4] sm:$0x3]  ;;  %v43_v60 = vld [vmem:[#allocation4 + $0x6] sm:$0x3] }
  0x29   :  { %v53_v5 = vunpack.c.0.s8 %v52_v2  ;;  %v519_v23 = vstv %s247_s11  ;;  %s455_s0 = smov [#allocation9]  }
  0x2a   :  { %v154_v6 = vmul.u32 64, %v55_v3  ;;  %v506_v11 = vsub.s32 0, %v55_v3  ;;  %v513_v14 = vmul.u32 32, %v55_v3  ;;  %s359_s12 = sshll.u32 %s455_s0, 4  ;;  %s360_s12 = int_to_ptr.vmem [resolvable:$true] %s359_s12 }
  0x2b   :  { %v503_v7 = vsub.s32 %v53_v5, %v55_v3  ;;  %s422_s13 = scalar_lea.vmem %s360_s12, 256  ;;  %p427_p3 = scmp.lt.s32.totalorder %s360_s12, %s360_s12 }
  0x2c   :  { %v155_v8 = vadd.s32 %v154_v6, %v151_v4  ;;  %p423_p2 = scmp.ne.s32.totalorder %s360_s12, %s422_s13  ;;  %p428_p4 = scmp.lt.s32.totalorder %s422_s13, %s422_s13 }
  0x2d   :  { %v57_v10 = vrot.slane %v48_v9, %v503_v7  ;;  %v528_v34 = vrot.slane %v50_v20, %v503_v7 }
  0x2e   :  { %v163_v12 = vrot.slane %v155_v8, %v503_v7  ;;  %v156_v21 = vcombine.high %v155_v8, %v155_v8  ;;  %p429_p5 = por %p428_p4, %p427_p3 }
  0x2f   :  { %v65_v15 = vcombine.high %v57_v10, %v57_v10  ;;  %v73_v17 = vrot.slane %v57_v10, %v503_v7  ;;  %v541_v51 = vrot.slane %v528_v34, %v503_v7  ;;  %v44_v10 = vld [vmem:[#allocation4 + $0x8] sm:$0x3] }
  0x30   :  { %v179_v13 = vrot.slane %v163_v12, %v503_v7  ;;  %v171_v16 = vcombine.high %v163_v12, %v163_v12  ;;  %v170_v35 = vrot.slane %v156_v21, %v503_v7  ;;  %p430_p6 = pnand %p429_p5, %p423_p2 }
  0x31   :  { %v102_v22 = vrot.slane %v73_v17, %v506_v11  ;;  %v87_v24 = vrot.slane %v65_v15, %v503_v7  ;;  %v95_v29 = vcombine.high %v73_v17, %v73_v17  ;;  %v118_v4 = vrot.slane %v541_v51, %v506_v11 }
  0x32   :  { %v209_v18 = vrot.slane %v179_v13, %v506_v11  ;;  %v193_v19 = vrot.slane %v171_v16, %v503_v7  ;;  %v201_v25 = vcombine.high %v179_v13, %v179_v13  ;;  %v186_v43 = vrot.slane %v170_v35, %v503_v7 }
  0x33   :  { %v139_v36 = vadd.f32 %v102_v22, %v40_v26  ;;  %v97_v38 = vcombine.high %v87_v24, %v87_v24  ;;  %v106_v41 = vrot.slane %v87_v24, %v506_v11  ;;  %v110_v45 = vrot.slane %v95_v29, %v506_v11 }
  0x34   :  { %v238_v27 = vadd.s32 %v209_v18, %v513_v14  ;;  %v213_v28 = vrot.slane %v193_v19, %v506_v11  ;;  %v217_v30 = vrot.slane %v201_v25, %v506_v11  ;;  %v203_v31 = vcombine.high %v193_v19, %v193_v19 }
  0x35   :  { %v225_v52 = vrot.slane %v186_v43, %v506_v11  ;;  %v329_v53 = vmul.f32 1.1111112, %v139_v36  ;;  %v114_v55 = vrot.slane %v97_v38, %v506_v11  ;;  %v140_v58 = vadd.f32 %v106_v41, %v41_v44 }
  0x36   :  { %v249_v32 = vxor.u32 %v519_v23, %v238_v27  ;;  %v239_v33 = vadd.s32 %v213_v28, %v513_v14  ;;  %v240_v37 = vadd.s32 %v217_v30, %v513_v14  ;;  %v221_v39 = vrot.slane %v203_v31, %v506_v11 }
  0x37   :  { %v242_v61 = vadd.s32 %v225_v52, %v513_v14  ;;  %v141_v62 = vadd.f32 %v110_v45, %v42_v50  ;;  %v172_v1 = vcombine.high %v170_v35, %v170_v35  ;;  %v142_v8 = vadd.f32 %v114_v55, %v43_v60 }
  0x38   :  { %v257_v40 = vshrl.u32 %v249_v32, 16  ;;  %v250_v42 = vxor.u32 %v519_v23, %v239_v33  ;;  %v251_v46 = vxor.u32 %v519_v23, %v240_v37  ;;  %v241_v47 = vadd.s32 %v221_v39, %v513_v14 }
  0x39   :  { %v253_v5 = vxor.u32 %v519_v23, %v242_v61  ;;  %v551_v12 = vrot.slane %v172_v1, %v503_v7  ;;  %v330_v16 = vmul.f32 1.1111112, %v140_v58  ;;  %v331_v19 = vmul.f32 1.1111112, %v141_v62  ;;  %v45_v1 = vld [vmem:[#allocation4 + $0xa] sm:$0x3] }
  0x3a   :  { %v265_v48 = vxor.u32 %v257_v40, %v249_v32  ;;  %v258_v49 = vshrl.u32 %v250_v42, 16  ;;  %v259_v54 = vshrl.u32 %v251_v46, 16  ;;  %v252_v56 = vxor.u32 %v519_v23, %v241_v47 }
  0x3b   :  { %v261_v17 = vshrl.u32 %v253_v5, 16  ;;  %v229_v21 = vrot.slane %v551_v12, %v506_v11  ;;  %v143_v25 = vadd.f32 %v118_v4, %v44_v10  ;;  %v332_v29 = vmul.f32 1.1111112, %v142_v8 }
  0x3c   :  { %v273_v57 = vmul.u32 2246822507, %v265_v48  ;;  %v266_v59 = vxor.u32 %v258_v49, %v250_v42  ;;  %v267_v63 = vxor.u32 %v259_v54, %v251_v46  ;;  %v260_v0 = vshrl.u32 %v252_v56, 16 }
  0x3d   :  { %v269_v26 = vxor.u32 %v261_v17, %v253_v5  ;;  %v243_v30 = vadd.s32 %v229_v21, %v513_v14  ;;  %v202_v35 = vcombine.high %v186_v43, %v186_v43  ;;  %v66_v38 = vcombine.high %v528_v34, %v528_v34 }
  0x3e   :  { %v281_v2 = vshrl.u32 %v273_v57, 13  ;;  %v274_v3 = vmul.u32 2246822507, %v266_v59  ;;  %v275_v6 = vmul.u32 2246822507, %v267_v63  ;;  %v268_v9 = vxor.u32 %v260_v0, %v252_v56 }
  0x3f   :  { %v277_v33 = vmul.u32 2246822507, %v269_v26  ;;  %v254_v39 = vxor.u32 %v519_v23, %v243_v30  ;;  %v233_v44 = vrot.slane %v202_v35, %v506_v11  ;;  %v333_v47 = vmul.f32 1.1111112, %v143_v25 }
  0x40   :  { %v289_v13 = vxor.u32 %v281_v2, %v273_v57  ;;  %v282_v15 = vshrl.u32 %v274_v3, 13  ;;  %v283_v18 = vshrl.u32 %v275_v6, 13  ;;  %v276_v20 = vmul.u32 2246822507, %v268_v9 }
  0x41   :  { %v285_v42 = vshrl.u32 %v277_v33, 13  ;;  %v262_v48 = vshrl.u32 %v254_v39, 16  ;;  %v244_v43 = vadd.s32 %v233_v44, %v513_v14  ;;  %v94_v57 = vrot.slane %v66_v38, %v503_v7 }
  0x42   :  { %v297_v22 = vmul.u32 3266489909, %v289_v13  ;;  %v290_v24 = vxor.u32 %v282_v15, %v274_v3  ;;  %v291_v27 = vxor.u32 %v283_v18, %v275_v6  ;;  %v284_v28 = vshrl.u32 %v276_v20, 13 }
  0x43   :  { %v293_v50 = vxor.u32 %v285_v42, %v277_v33  ;;  %v270_v34 = vxor.u32 %v262_v48, %v254_v39  ;;  %v255_v58 = vxor.u32 %v519_v23, %v244_v43  ;;  %v96_v7 = vcombine.high %v541_v51, %v541_v51 }
  0x44   :  { %v305_v31 = vshrl.u32 %v297_v22, 16  ;;  %v298_v32 = vmul.u32 3266489909, %v290_v24  ;;  %v299_v36 = vmul.u32 3266489909, %v291_v27  ;;  %v292_v37 = vxor.u32 %v284_v28, %v276_v20 }
  0x45   :  { %v301_v56 = vmul.u32 3266489909, %v293_v50  ;;  %v278_v61 = vmul.u32 2246822507, %v270_v34  ;;  %v263_v0 = vshrl.u32 %v255_v58, 16  ;;  %v204_v3 = vcombine.high %v551_v12, %v551_v12 }
  0x46   :  { %v313_v40 = vxor.u32 %v305_v31, %v297_v22  ;;  %v306_v41 = vshrl.u32 %v298_v32, 16  ;;  %v307_v45 = vshrl.u32 %v299_v36, 16  ;;  %v300_v46 = vmul.u32 3266489909, %v292_v37  ;;  %v46_v12 = vld [vmem:[#allocation4 + $0xc] sm:$0x3] }
  0x47   :  { %v309_v63 = vshrl.u32 %v301_v56, 16  ;;  %v286_v2 = vshrl.u32 %v278_v61, 13  ;;  %v271_v6 = vxor.u32 %v263_v0, %v255_v58  ;;  %v237_v9 = vrot.slane %v204_v3, %v506_v11 }
  0x48   :  { %vm321_vm1 = vcmp.ge.u32.totalorder %v313_v40, 429496730  ;;  %v314_v49 = vxor.u32 %v306_v41, %v298_v32  ;;  %v315_v54 = vxor.u32 %v307_v45, %v299_v36  ;;  %v308_v55 = vshrl.u32 %v300_v46, 16  ;;  %v47_v36 = vld [vmem:[#allocation4 + $0xe] sm:$0x3] }
  0x49   :  { %v337_v52 = vsel %vm321_vm1, %v329_v53, 0.0  ;;  %v122_v53 = vrot.slane %v94_v57, %v506_v11  ;;  %v317_v5 = vxor.u32 %v309_v63, %v301_v56  ;;  %v294_v8 = vxor.u32 %v286_v2, %v278_v61 }
  0x4a   :  { %346 = vst.msk [vmem:[#allocation9] sm:$0x3] %vm345_vm0, %v337_v52  ;;  %vm322_vm2 = vcmp.ge.u32.totalorder %v314_v49, 429496730  ;;  %vm323_vm3 = vcmp.ge.u32.totalorder %v315_v54, 429496730  ;;  %v316_v60 = vxor.u32 %v308_v55, %v300_v46  ;;  %v126_v17 = vrot.slane %v96_v7, %v506_v11 }
  0x4b   :  { %v338_v59 = vsel %vm322_vm2, %v330_v16, 0.0  ;;  %v339_v62 = vsel %vm323_vm3, %v331_v19, 0.0  ;;  %vm325_vm5 = vcmp.ge.u32.totalorder %v317_v5, 429496730  ;;  %v144_v10 = vadd.f32 %v122_v53, %v45_v1 }
  0x4c   :  { %347 = vst.msk [vmem:[#allocation9 + $0x2] sm:$0x3] %vm345_vm0, %v338_v59  ;;  %348 = vst.msk [vmem:[#allocation9 + $0x4] sm:$0x3] %vm345_vm0, %v339_v62  ;;  %vm324_vm4 = vcmp.ge.u32.totalorder %v316_v60, 429496730  ;;  %v245_v51 = vadd.s32 %v237_v9, %v513_v14  ;;  %v145_v25 = vadd.f32 %v126_v17, %v46_v12  ;;  %v98_v28 = vcombine.high %v94_v57, %v94_v57 }
  0x4d   :  { %v340_v4 = vsel %vm324_vm4, %v332_v29, 0.0  ;;  %v279_v13 = vmul.u32 2246822507, %v271_v6  ;;  %v341_v15 = vsel %vm325_vm5, %v333_v47, 0.0  ;;  %v302_v16 = vmul.u32 3266489909, %v294_v8 }
  0x4e   :  { %349 = vst.msk [vmem:[#allocation9 + $0x6] sm:$0x3] %vm345_vm0, %v340_v4  ;;  %350 = vst.msk [vmem:[#allocation9 + $0x8] sm:$0x3] %vm345_vm0, %v341_v15  ;;  %v256_v20 = vxor.u32 %v519_v23, %v245_v51  ;;  %v334_v21 = vmul.f32 1.1111112, %v144_v10  ;;  %v130_v35 = vrot.slane %v98_v28, %v506_v11 }
  0x4f   :  { %v287_v18 = vshrl.u32 %v279_v13, 13  ;;  %v310_v19 = vshrl.u32 %v302_v16, 16  ;;  %v335_v14 = vmul.f32 1.1111112, %v145_v25 }
  0x50   :  { %v264_v26 = vshrl.u32 %v256_v20, 16  ;;  %v146_v39 = vadd.f32 %v130_v35, %v47_v36 }
  0x51   :  { %v295_v22 = vxor.u32 %v287_v18, %v279_v13  ;;  %v318_v24 = vxor.u32 %v310_v19, %v302_v16 }
  0x52   :  { %v272_v29 = vxor.u32 %v264_v26, %v256_v20  ;;  %v336_v42 = vmul.f32 1.1111112, %v146_v39 }
  0x53   :  { %v303_v27 = vmul.u32 3266489909, %v295_v22  ;;  %vm326_vm6 = vcmp.ge.u32.totalorder %v318_v24, 429496730 }
  0x54   :  { %v342_v30 = vsel %vm326_vm6, %v334_v21, 0.0  ;;  %v280_v32 = vmul.u32 2246822507, %v272_v29 }
  0x55   :  { %v311_v31 = vshrl.u32 %v303_v27, 16  ;;  %351 = vst.msk [vmem:[#allocation9 + $0xa] sm:$0x3] %vm345_vm0, %v342_v30 }
  0x56   :  { %v288_v23 = vshrl.u32 %v280_v32, 13 }
  0x57   :  { %v319_v33 = vxor.u32 %v311_v31, %v303_v27 }
  0x58   :  { %v296_v38 = vxor.u32 %v288_v23, %v280_v32 }
  0x59   :  { %vm327_vm7 = vcmp.ge.u32.totalorder %v319_v33, 429496730 }
  0x5a   :  { %v343_v37 = vsel %vm327_vm7, %v335_v14, 0.0  ;;  %v304_v40 = vmul.u32 3266489909, %v296_v38 }
  0x5b   :  { %352 = vst.msk [vmem:[#allocation9 + $0xc] sm:$0x3] %vm345_vm0, %v343_v37 }
  0x5c   :  { %v312_v41 = vshrl.u32 %v304_v40, 16 }
  0x5e   :  { %v320_v44 = vxor.u32 %v312_v41, %v304_v40 }
  0x60   :  { %vm328_vm8 = vcmp.ge.u32.totalorder %v320_v44, 429496730 }
  0x61   :  { %v344_v45 = vsel %vm328_vm8, %v336_v42, 0.0 }
  0x62   :  { %353 = vst.msk [vmem:[#allocation9 + $0xe] sm:$0x3] %vm345_vm0, %v344_v45 }
  0x63   :  { %433 = shalt.err (!%p430_p6)
}
  0x64   :  { %s434_s16 = scalar_lea.hbm %s599_s3, 256 }
  0x65   :  { %p435_p7 = scmp.ne.s32.totalorder %s599_s3, %s434_s16  ;;  %p438_p8 = scmp.lt.u32.totalorder %s434_s16, %s599_s3 }
  0x67   :  { %p440_p9 = pnand %p438_p8, %p435_p7 }
  0x69   :  { %443 = shalt.err (!%p440_p9)
}
  0x6a   :  { %365 = dma.vmem_to_hbm [thread:$0]  %s360_s12, 256, %s599_s3, [#allocation6], %s451_s22, %s451_s22, %s452_s23  }
  0x6b   :  { %448 = dma.done.wait [#allocation6], 256  }
  0x6c   :  { %449 = vsyncadd [#allocation6], 4294967040 }
  0x6d   :  { %369 = vsyncpa [#allocation5], 1 }
  0x6e   :  { %370 = vsyncpa [#allocation8], 1 }
  0x6f   :  { %371 = vsyncpa [#allocation6], 1 }

</bundles_post_ra>
